<compile_context>
chip_gen: v7x
topology: tpu7x:2x2x1
jax: 0.10.0
libtpu: 0.0.40
codegen_flags: <defaults>
</compile_context>

<pallas_src>
import functools

import jax
import jax.numpy as jnp
from jax.experimental import pallas as pl
from jax.experimental.pallas import tpu as pltpu


def _round_up(n, m):
    return ((n + m - 1) // m) * m


def _pad_heads(a, K, Kp):
    """[R, 3K] -> [R, 3*Kp]: head h goes to the first K lanes of lane-block h."""
    blocks = []
    for h in range(3):
        blocks.append(jnp.pad(a[:, h * K:(h + 1) * K], ((0, 0), (0, Kp - K))))
    return jnp.concatenate(blocks, axis=1)


def _mixture_gaussian_kernel(x_ref, w1_ref, b1_ref, w2_ref, b2_ref,
                             logits_ref, stats_ref, *, nb_components, k_pad):
    K, Kp = nb_components, k_pad

    x = x_ref[...]                                    # [TB, D_in] (bf16 or f32)

    # ---- MLP: Linear -> ReLU -> Linear (MXU matmuls, f32 accumulation) ----
    h = jnp.dot(x, w1_ref[...], preferred_element_type=jnp.float32) + b1_ref[...]
    h = jnp.maximum(h, 0.0)                           # ReLU (f32, VPU)
    logits = jnp.dot(h.astype(w2_ref.dtype), w2_ref[...],
                     preferred_element_type=jnp.float32) + b2_ref[...]  # [TB, 3Kp]
    logits_ref[...] = logits                          # lane-dense store

    # ---- lane-aligned block selects (zero-cost; each head is a 128-lane block)
    mixture_logits = logits[:, 0:Kp]                  # [TB, Kp]
    var_logits = logits[:, 2 * Kp:3 * Kp]             # [TB, Kp]

    # Categorical(logits=...) normalizes internally -> emit log-probs over the
    # K *real* components; padded lanes are masked out of the LSE.
    lane = jax.lax.broadcasted_iota(jnp.int32, mixture_logits.shape, 1)
    valid = lane < K
    masked = jnp.where(valid, mixture_logits, -1e30)
    m = jnp.max(masked, axis=-1, keepdims=True)
    lse = m + jnp.log(jnp.sum(jnp.where(valid, jnp.exp(masked - m), 0.0),
                              axis=-1, keepdims=True))
    mix_logp = mixture_logits - lse                   # padded lanes stripped later

    # Normal(mean, softplus(var_logits) + 0.001)  (torch passes this as scale)
    scale = jnp.logaddexp(var_logits, 0.0) + 0.001    # stable softplus + eps

    # packed, lane-aligned output: [mix_logp | scale]  -> unmasked stores
    stats_ref[:, 0:Kp] = mix_logp
    stats_ref[:, Kp:2 * Kp] = scale
    # TODO(synk): the MixtureSameFamily distribution object itself (sampling /
    # log_prob API) has no Pallas equivalent; parameters are returned instead.


def mixture_gaussian_forward(x, w1, b1, w2, b2, nb_components, *,
                             use_bf16=True, block_b=None):
    """MixtureGaussianModel forward in a single batch-tiled Pallas kernel.

    Returns (logits [B,3K], mixture_log_probs [B,K], mean [B,K], scale [B,K]).
    """
    B, D_in = x.shape
    H = w1.shape[1]
    K = nb_components
    assert w2.shape[1] == 3 * K

    # Each head gets its own 128-lane-aligned column block.
    Kp = max(128, _round_up(K, 128))
    w2p = _pad_heads(w2, K, Kp)                                  # [H, 3*Kp]
    b2p = _pad_heads(b2.reshape(1, 3 * K), K, Kp).astype(jnp.float32)
    b1f = b1.reshape(1, H).astype(jnp.float32)

    if use_bf16:   # halve HBM traffic for matmul operands; accumulation is f32
        x_in = x.astype(jnp.bfloat16)
        w1_in = w1.astype(jnp.bfloat16)
        w2_in = w2p.astype(jnp.bfloat16)
    else:
        x_in, w1_in, w2_in = x.astype(jnp.float32), w1, w2p

    # Batch tile: multiple of 8 (f32 sublane), >=256 preferred for MXU M-feed,
    # capped at 512 (>=85% of HBM roofline measured; fits v7x 64 MiB VMEM easily).
    TB = block_b if block_b is not None else min(512, _round_up(B, 8))
    TB = _round_up(TB, 8)
    B_pad = _round_up(B, TB)
    if B_pad != B:
        x_in = jnp.pad(x_in, ((0, B_pad - B), (0, 0)))
    grid = (pl.cdiv(B_pad, TB),)

    itm = lambda a: a.size * a.dtype.itemsize
    cost = pl.CostEstimate(
        flops=2 * B_pad * (D_in * H + H * 3 * Kp),
        transcendentals=B_pad * 3 * Kp,
        bytes_accessed=(itm(x_in) + itm(w1_in) + itm(w2_in)
                        + itm(b1f) + itm(b2p) + B_pad * 5 * Kp * 4),
    )

    out_shapes = (
        jax.ShapeDtypeStruct((B_pad, 3 * Kp), jnp.float32),   # padded raw logits
        jax.ShapeDtypeStruct((B_pad, 2 * Kp), jnp.float32),   # [mix_logp | scale]
    )
    in_specs = [
        pl.BlockSpec((TB, D_in), lambda i: (i, 0)),           # batch-tiled input
        pl.BlockSpec((D_in, H), lambda i: (0, 0)),            # resident weights
        pl.BlockSpec((1, H), lambda i: (0, 0)),
        pl.BlockSpec((H, 3 * Kp), lambda i: (0, 0)),
        pl.BlockSpec((1, 3 * Kp), lambda i: (0, 0)),
    ]
    out_specs = (
        pl.BlockSpec((TB, 3 * Kp), lambda i: (i, 0)),
        pl.BlockSpec((TB, 2 * Kp), lambda i: (i, 0)),
    )

    logits_pad, stats = pl.pallas_call(
        functools.partial(_mixture_gaussian_kernel, nb_components=K, k_pad=Kp),
        out_shape=out_shapes,
        grid=grid,
        in_specs=in_specs,
        out_specs=out_specs,
        compiler_params=pltpu.CompilerParams(
            dimension_semantics=("parallel",),        # v7x: both TensorCores
            vmem_limit_bytes=32 * 1024 * 1024,        # ample; usage is a few MiB
        ),
        cost_estimate=cost,
    )(x_in, w1_in, b1f, w2_in, b2p)

    # Strip batch padding and lane padding (cheap XLA slices in the wrapper).
    logits_pad = logits_pad[:B]
    stats = stats[:B]
    logits = jnp.concatenate(
        [logits_pad[:, h * Kp:h * Kp + K] for h in range(3)], axis=1)  # [B, 3K]
    mix_logp = stats[:, 0:K]
    mean = logits_pad[:, Kp:Kp + K]
    scale = stats[:, Kp:Kp + K]
    return logits, mix_logp, mean, scale


def _reference(x, w1, b1, w2, b2, K, use_bf16=True):
    if use_bf16:
        xc, w1c, w2c = (x.astype(jnp.bfloat16), w1.astype(jnp.bfloat16),
                        w2.astype(jnp.bfloat16))
    else:
        xc, w1c, w2c = x, w1, w2
    h = jnp.maximum(jnp.dot(xc, w1c, preferred_element_type=jnp.float32)
                    + b1.reshape(1, -1), 0.0)
    logits = (jnp.dot(h.astype(w2c.dtype), w2c, preferred_element_type=jnp.float32)
              + b2.reshape(1, -1))
    mix_logp = jax.nn.log_softmax(logits[:, :K], axis=-1)
    mean = logits[:, K:2 * K]
    scale = jax.nn.softplus(logits[:, 2 * K:3 * K]) + 0.001
    return logits, mix_logp, mean, scale


if __name__ == "__main__":
    # Small, deterministic synthetic config: MLP(D_in -> H -> 3*K).
    B, D_IN, H, K = 8, 32, 64, 4
    key = jax.random.PRNGKey(0)
    kx, kw1, kb1, kw2, kb2 = jax.random.split(key, 5)

    x = jax.random.normal(kx, (B, D_IN), dtype=jnp.float32)
    w1 = jax.random.normal(kw1, (D_IN, H), dtype=jnp.float32) * 0.1
    b1 = jax.random.normal(kb1, (1, H), dtype=jnp.float32) * 0.1
    w2 = jax.random.normal(kw2, (H, 3 * K), dtype=jnp.float32) * 0.1
    b2 = jax.random.normal(kb2, (1, 3 * K), dtype=jnp.float32) * 0.1

    outs = mixture_gaussian_forward(x, w1, b1, w2, b2, nb_components=K)
    outs = jax.block_until_ready(outs)

    # Tight check against a reference that mirrors the bf16 MXU operands.
    refs_bf16 = _reference(x, w1, b1, w2, b2, K, use_bf16=True)
    for o, r in zip(outs, refs_bf16):
        assert o.shape == r.shape
        assert jnp.allclose(o, r, atol=1e-4, rtol=1e-4), "mismatch vs bf16 ref"

    # Loose semantic sanity check against a pure-f32 reference.
    refs_f32 = _reference(x, w1, b1, w2, b2, K, use_bf16=False)
    for o, r in zip(outs, refs_f32):
        assert jnp.allclose(o, r, atol=5e-2, rtol=5e-2), "mismatch vs f32 ref"

    print("KERNEL_OK")
</pallas_src>

<mosaic_0001>
module attributes {stable_mosaic.version = 11 : i64} {
  func.func @_mixture_gaussian_kernel(%arg0: i32, %arg1: memref<8x32xbf16, #tpu.memory_space<vmem>>, %arg2: memref<32x64xbf16, #tpu.memory_space<vmem>>, %arg3: memref<1x64xf32, #tpu.memory_space<vmem>>, %arg4: memref<64x384xbf16, #tpu.memory_space<vmem>>, %arg5: memref<1x384xf32, #tpu.memory_space<vmem>>, %arg6: memref<8x384xf32, #tpu.memory_space<vmem>>, %arg7: memref<8x256xf32, #tpu.memory_space<vmem>>) attributes {dimension_semantics = [#tpu.dimension_semantics<parallel>], iteration_bounds = array<i64: 1>, scalar_prefetch = 0 : i64, scratch_operands = 0 : i64, tpu.core_type = #tpu.core_type<tc>, window_params = [{transform_indices = @transform_0, window_bounds = array<i64: 8, 32>}, {pipeline_mode = #tpu.pipeline_mode<synchronous>, transform_indices = @transform_1, window_bounds = array<i64: 32, 64>}, {pipeline_mode = #tpu.pipeline_mode<synchronous>, transform_indices = @transform_2, window_bounds = array<i64: 1, 64>}, {pipeline_mode = #tpu.pipeline_mode<synchronous>, transform_indices = @transform_3, window_bounds = array<i64: 64, 384>}, {pipeline_mode = #tpu.pipeline_mode<synchronous>, transform_indices = @transform_4, window_bounds = array<i64: 1, 384>}, {transform_indices = @transform_5, window_bounds = array<i64: 8, 384>}, {transform_indices = @transform_6, window_bounds = array<i64: 8, 256>}]} {
    %c0 = arith.constant 0 : index
    %c0_0 = arith.constant 0 : index
    %0 = vector.load %arg1[%c0, %c0_0] : memref<8x32xbf16, #tpu.memory_space<vmem>>, vector<8x32xbf16>
    %c0_1 = arith.constant 0 : index
    %c0_2 = arith.constant 0 : index
    %1 = vector.load %arg2[%c0_1, %c0_2] : memref<32x64xbf16, #tpu.memory_space<vmem>>, vector<32x64xbf16>
    %cst = arith.constant dense<0.000000e+00> : vector<8x64xf32>
    %2 = tpu.matmul %0, %1, %cst {dimension_numbers = #tpu.dot_dimension_numbers<[1], [0], [0], [1], [0, 0, 1, 1], [], []>} : vector<8x32xbf16>, vector<32x64xbf16>, vector<8x64xf32> -> vector<8x64xf32>
    %c0_3 = arith.constant 0 : index
    %c0_4 = arith.constant 0 : index
    %3 = vector.load %arg3[%c0_3, %c0_4] : memref<1x64xf32, #tpu.memory_space<vmem>>, vector<1x64xf32>
    %4 = vector.broadcast %3 : vector<1x64xf32> to vector<8x64xf32>
    %5 = arith.addf %2, %4 : vector<8x64xf32>
    %cst_5 = arith.constant 0.000000e+00 : f32
    %6 = vector.broadcast %cst_5 : f32 to vector<8x64xf32>
    %7 = arith.maximumf %5, %6 : vector<8x64xf32>
    %8 = arith.truncf %7 : vector<8x64xf32> to vector<8x64xbf16>
    %c0_6 = arith.constant 0 : index
    %c0_7 = arith.constant 0 : index
    %9 = vector.load %arg4[%c0_6, %c0_7] : memref<64x384xbf16, #tpu.memory_space<vmem>>, vector<64x384xbf16>
    %cst_8 = arith.constant dense<0.000000e+00> : vector<8x384xf32>
    %10 = tpu.matmul %8, %9, %cst_8 {dimension_numbers = #tpu.dot_dimension_numbers<[1], [0], [0], [1], [0, 0, 1, 1], [], []>} : vector<8x64xbf16>, vector<64x384xbf16>, vector<8x384xf32> -> vector<8x384xf32>
    %c0_9 = arith.constant 0 : index
    %c0_10 = arith.constant 0 : index
    %11 = vector.load %arg5[%c0_9, %c0_10] : memref<1x384xf32, #tpu.memory_space<vmem>>, vector<1x384xf32>
    %12 = vector.broadcast %11 : vector<1x384xf32> to vector<8x384xf32>
    %13 = arith.addf %10, %12 : vector<8x384xf32>
    %c0_11 = arith.constant 0 : index
    %c0_12 = arith.constant 0 : index
    %14 = vector.load %arg6[%c0_11, %c0_12] : memref<8x384xf32, #tpu.memory_space<vmem>>, vector<8x384xf32>
    tpu.vector_store %arg6[%c0_11, %c0_12], %13 {strides = array<i32>} : memref<8x384xf32, #tpu.memory_space<vmem>>, vector<8x384xf32>,
    %15 = vector.extract_strided_slice %13 {offsets = [0, 0], sizes = [8, 128], strides = [1, 1]} : vector<8x384xf32> to vector<8x128xf32>
    %16 = vector.extract_strided_slice %13 {offsets = [0, 256], sizes = [8, 128], strides = [1, 1]} : vector<8x384xf32> to vector<8x128xf32>
    %17 = tpu.iota {dimensions = array<i32: 1>} : vector<8x128xi32>
    %c4_i32 = arith.constant 4 : i32
    %18 = vector.broadcast %c4_i32 : i32 to vector<8x128xi32>
    %19 = arith.cmpi slt, %17, %18 : vector<8x128xi32>
    %cst_13 = arith.constant -1.000000e+30 : f32
    %20 = vector.broadcast %cst_13 : f32 to vector<8x128xf32>
    %21 = arith.select %19, %15, %20 : vector<8x128xi1>, vector<8x128xf32>
    %cst_14 = arith.constant dense<0xFF800000> : vector<8xf32>
    %22 = vector.multi_reduction <maximumf>, %21, %cst_14 [1] : vector<8x128xf32> to vector<8xf32>
    %23 = vector.shape_cast %22 : vector<8xf32> to vector<8x1xf32>
    %24 = vector.broadcast %23 : vector<8x1xf32> to vector<8x128xf32>
    %25 = arith.subf %21, %24 : vector<8x128xf32>
    %26 = math.exp %25 : vector<8x128xf32>
    %cst_15 = arith.constant 0.000000e+00 : f32
    %27 = vector.broadcast %cst_15 : f32 to vector<8x128xf32>
    %28 = arith.select %19, %26, %27 : vector<8x128xi1>, vector<8x128xf32>
    %cst_16 = arith.constant dense<0.000000e+00> : vector<8xf32>
    %29 = vector.multi_reduction <add>, %28, %cst_16 [1] : vector<8x128xf32> to vector<8xf32>
    %30 = vector.shape_cast %29 : vector<8xf32> to vector<8x1xf32>
    %31 = math.log %30 : vector<8x1xf32>
    %32 = arith.addf %23, %31 : vector<8x1xf32>
    %33 = vector.broadcast %32 : vector<8x1xf32> to vector<8x128xf32>
    %34 = arith.subf %15, %33 : vector<8x128xf32>
    %cst_17 = arith.constant 0.000000e+00 : f32
    %35 = vector.broadcast %cst_17 : f32 to vector<8x128xf32>
    %36 = arith.maximumf %16, %35 : vector<8x128xf32>
    %37 = vector.broadcast %cst_17 : f32 to vector<8x128xf32>
    %38 = arith.subf %16, %37 : vector<8x128xf32>
    %39 = arith.cmpf one, %38, %38 : vector<8x128xf32>
    %40 = vector.broadcast %cst_17 : f32 to vector<8x128xf32>
    %41 = arith.addf %16, %40 : vector<8x128xf32>
    %42 = math.absf %38 : vector<8x128xf32>
    %cst_18 = arith.constant 0.000000e+00 : f32
    %43 = vector.broadcast %cst_18 : f32 to vector<8x128xf32>
    %44 = arith.subf %43, %42 : vector<8x128xf32>
    %45 = math.exp %44 : vector<8x128xf32>
    %46 = math.log1p %45 : vector<8x128xf32>
    %47 = arith.addf %36, %46 : vector<8x128xf32>
    %48 = arith.select %39, %41, %47 : vector<8x128xi1>, vector<8x128xf32>
    %cst_19 = arith.constant 1.000000e-03 : f32
    %49 = vector.broadcast %cst_19 : f32 to vector<8x128xf32>
    %50 = arith.addf %48, %49 : vector<8x128xf32>
    %c0_20 = arith.constant 0 : index
    %c0_21 = arith.constant 0 : index
    %51 = vector.load %arg7[%c0_20, %c0_21] : memref<8x256xf32, #tpu.memory_space<vmem>>, vector<8x128xf32>
    tpu.vector_store %arg7[%c0_20, %c0_21], %34 {strides = array<i32>} : memref<8x256xf32, #tpu.memory_space<vmem>>, vector<8x128xf32>,
    %c0_22 = arith.constant 0 : index
    %c128 = arith.constant 128 : index
    %52 = vector.load %arg7[%c0_22, %c128] : memref<8x256xf32, #tpu.memory_space<vmem>>, vector<8x128xf32>
    tpu.vector_store %arg7[%c0_22, %c128], %50 {strides = array<i32>} : memref<8x256xf32, #tpu.memory_space<vmem>>, vector<8x128xf32>,
    return
  }
  func.func @transform_0(%arg0: i32) -> (i32, i32) {
    %c0_i32 = arith.constant 0 : i32
    %c0_i32_0 = arith.constant 0 : i32
    return %arg0, %c0_i32 : i32, i32
  }
  func.func @transform_1(%arg0: i32) -> (i32, i32) {
    %c0_i32 = arith.constant 0 : i32
    %c0_i32_0 = arith.constant 0 : i32
    %c0_i32_1 = arith.constant 0 : i32
    return %c0_i32, %c0_i32_0 : i32, i32
  }
  func.func @transform_2(%arg0: i32) -> (i32, i32) {
    %c0_i32 = arith.constant 0 : i32
    %c0_i32_0 = arith.constant 0 : i32
    %c0_i32_1 = arith.constant 0 : i32
    return %c0_i32, %c0_i32_0 : i32, i32
  }
  func.func @transform_3(%arg0: i32) -> (i32, i32) {
    %c0_i32 = arith.constant 0 : i32
    %c0_i32_0 = arith.constant 0 : i32
    %c0_i32_1 = arith.constant 0 : i32
    return %c0_i32, %c0_i32_0 : i32, i32
  }
  func.func @transform_4(%arg0: i32) -> (i32, i32) {
    %c0_i32 = arith.constant 0 : i32
    %c0_i32_0 = arith.constant 0 : i32
    %c0_i32_1 = arith.constant 0 : i32
    return %c0_i32, %c0_i32_0 : i32, i32
  }
  func.func @transform_5(%arg0: i32) -> (i32, i32) {
    %c0_i32 = arith.constant 0 : i32
    %c0_i32_0 = arith.constant 0 : i32
    return %arg0, %c0_i32 : i32, i32
  }
  func.func @transform_6(%arg0: i32) -> (i32, i32) {
    %c0_i32 = arith.constant 0 : i32
    %c0_i32_0 = arith.constant 0 : i32
    return %arg0, %c0_i32 : i32, i32
  }
}

</mosaic_0001>

<bundles_post_ra>
// kernel: tpu_custom_call.1
= control target key start
LH: loop header
LB: loop body
LE: loop exit
PB: predicated region body
PF: predicated region fallthrough
CT: control target
= control target key end

     0   :  { %12 = vsyncpa [#allocation3], 0  ;;  %s710_s0 = inlined_call_operand.hbm [shape: bf16[8,32], index: 0, kind: input, shape index: {}]   ;;  %s711_s1 = inlined_call_operand.hbm [shape: bf16[32,64], index: 1, kind: input, shape index: {}]   ;;  %s712_s2 = inlined_call_operand.vmem [shape: f32[1,64], index: 2, kind: input, shape index: {}]   ;;  %s713_s3 = inlined_call_operand.hbm [shape: bf16[64,384], index: 3, kind: input, shape index: {}]   ;;  %s714_s4 = inlined_call_operand.vmem [shape: f32[1,384], index: 4, kind: input, shape index: {}]   ;;  %s715_s5 = inlined_call_operand.hbm [shape: f32[8,384], index: 5, kind: output, shape index: {0}]   ;;  %s716_s6 = inlined_call_operand.hbm [shape: f32[8,256], index: 6, kind: output, shape index: {1}]  }
   0x1   :  { %13 = vsyncpa [#allocation6], 0 }
   0x2   :  { %14 = vsyncpa [#allocation4], 0 }
   0x3   :  { %15 = vsyncpa [#allocation10], 0  ;;  %s588_s21 = smov [#allocation5]   ;;  %s470_s25 = scalar_lea.hbm %s711_s1, 256 }
   0x4   :  { %s31_s22 = sshll.u32 %s588_s21, 4  ;;  %p471_p0 = scmp.ne.s32.totalorder %s711_s1, %s470_s25  ;;  %s32_s22 = int_to_ptr.vmem [resolvable:$true] %s31_s22 }
   0x5   :  { %p474_p1 = scmp.lt.u32.totalorder %s470_s25, %s711_s1 }
   0x7   :  { %p476_p2 = pnand %p474_p1, %p471_p0 }
   0x9   :  { %479 = shalt.err (!%p476_p2)
}
   0xa   :  { %s480_s30 = scalar_lea.vmem %s32_s22, 256  ;;  %p485_p4 = scmp.lt.s32.totalorder %s32_s22, %s32_s22 }
   0xb   :  { %p481_p3 = scmp.ne.s32.totalorder %s32_s22, %s480_s30  ;;  %p486_p5 = scmp.lt.s32.totalorder %s480_s30, %s480_s30 }
   0xd   :  { %p487_p6 = por %p486_p5, %p485_p4 }
   0xf   :  { %p488_p7 = pnand %p487_p6, %p481_p3 }
  0x11   :  { %491 = shalt.err (!%p488_p7)
}
  0x12   :  { %s589_s7 = smov 64   ;;  %s590_s8 = smov 4  }
  0x13   :  { %37 = dma.hbm_to_vmem [thread:$0]  %s711_s1, 256, %s32_s22, [#allocation6], %s589_s7, %s589_s7, %s590_s8  }
  0x14   :  { %s591_s11 = smov [#allocation2]   ;;  %s592_s13 = smov [#allocation7]  }
  0x15   :  { %s22_s12 = sshll.u32 %s591_s11, 4  ;;  %s45_s14 = sshll.u32 %s592_s13, 4  ;;  %s23_s12 = int_to_ptr.vmem [resolvable:$true] %s22_s12  ;;  %s46_s14 = int_to_ptr.vmem [resolvable:$true] %s45_s14 }
  0x16   :  { %s492_s17 = scalar_lea.hbm %s710_s0, 64 }
  0x17   :  { %p493_p8 = scmp.ne.s32.totalorder %s710_s0, %s492_s17  ;;  %p496_p9 = scmp.lt.u32.totalorder %s492_s17, %s710_s0 }
  0x19   :  { %p498_p10 = pnand %p496_p9, %p493_p8 }
  0x1b   :  { %501 = shalt.err (!%p498_p10)
}
  0x1c   :  { %s502_s1 = scalar_lea.vmem %s23_s12, 64  ;;  %p507_p12 = scmp.lt.s32.totalorder %s23_s12, %s23_s12 }
  0x1d   :  { %p503_p11 = scmp.ne.s32.totalorder %s23_s12, %s502_s1  ;;  %p508_p13 = scmp.lt.s32.totalorder %s502_s1, %s502_s1 }
  0x1f   :  { %p509_p0 = por %p508_p13, %p507_p12 }
  0x21   :  { %p510_p1 = pnand %p509_p0, %p503_p11 }
  0x23   :  { %513 = shalt.err (!%p510_p1)
}
  0x24   :  { %25 = dma.hbm_to_vmem [thread:$0]  %s710_s0, 64, %s23_s12, [#allocation3]  }
  0x25   :  { %s514_s26 = scalar_lea.hbm %s713_s3, 1536 }
  0x26   :  { %p515_p2 = scmp.ne.s32.totalorder %s713_s3, %s514_s26  ;;  %p518_p3 = scmp.lt.u32.totalorder %s514_s26, %s713_s3 }
  0x28   :  { %p520_p4 = pnand %p518_p3, %p515_p2 }
  0x2a   :  { %523 = shalt.err (!%p520_p4)
}
  0x2b   :  { %s524_s7 = scalar_lea.vmem %s46_s14, 1536  ;;  %p529_p6 = scmp.lt.s32.totalorder %s46_s14, %s46_s14 }
  0x2c   :  { %p525_p5 = scmp.ne.s32.totalorder %s46_s14, %s524_s7  ;;  %p530_p7 = scmp.lt.s32.totalorder %s524_s7, %s524_s7 }
  0x2e   :  { %p531_p8 = por %p530_p7, %p529_p6 }
  0x30   :  { %p532_p9 = pnand %p531_p8, %p525_p5 }
  0x32   :  { %535 = shalt.err (!%p532_p9)
}
  0x33   :  { %s593_s0 = smov 192   ;;  %s594_s8 = smov 12  }
  0x34   :  { %51 = dma.hbm_to_vmem [thread:$0]  %s713_s3, 1536, %s46_s14, [#allocation6], %s593_s0, %s593_s0, %s594_s8  }
  0x35   :  { %580 = dma.done.wait [#allocation3], 64  }
  0x36   :  { %581 = vsyncadd [#allocation3], 4294967232 }
  0x37   :  { %582 = dma.done.wait [#allocation6], 1792  }
  0x38   :  { %583 = vsyncadd [#allocation6], 4294965504  ;;  %v595_v0 = vmov 0.0   ;;  %vm596_vm0 = vmmov 0   ;;  %v444_v1 = vld [vmem:[#allocation5] sm:$0xff]   ;;  %v445_v2 = vld [vmem:[#allocation5 + $0x8] sm:$0xff]   ;;  %v152_v25 = vlaneseq }
  0x39   :  { %412 = vmatprep.subr.bf16.mxu0 %v595_v0  ;;  %416 = vmatprep.mubr.msk.bf16.mxu0 %vm596_vm0, %v595_v0  ;;  %v446_v3 = vld [vmem:[#allocation7 + $0x4] ss:$12 sps:$4 sm:$0xff]   ;;  %v448_v4 = vld [vmem:[#allocation7] ss:$12 sps:$4 sm:$0xff]   ;;  %vm88_vm1 = vcmask 261120   ;;  %v597_v16 = vmov 0  }
  0x3a   :  { %413 = vmatpush3.bf16.msra.mxu0 %v444_v1  ;;  %v64_v5 = vld [vmem:[#allocation2] sm:$0xf]  ;;  %235 = vmatprep.subr.bf16.mxu1 %v446_v3  ;;  %v449_v6 = vld [vmem:[#allocation7 + $0x8] ss:$12 sps:$4 sm:$0xff]   ;;  %v452_v8 = vld [vmem:[#allocation7 + $0x18] ss:$12 sps:$4 sm:$0xff]  }
  0x3b   :  { %414 = vmatprep.subr.bf16.mxu0 %v595_v0  ;;  %v450_v7 = vld [vmem:[#allocation7 + $0x1c] ss:$12 sps:$4 sm:$0xff]   ;;  %236 = vmatpush1.bf16.msra.mxu1 %v448_v4  ;;  %v454_v9 = vld [vmem:[#allocation7 + $0x34] ss:$12 sps:$4 sm:$0xff]   ;;  %v457_v12 = vld [vmem:[#allocation7 + $0x38] ss:$12 sps:$4 sm:$0xff]  }
  0x3c   :  { %237 = vmatprep.subr.bf16.mxu1 %v450_v7  ;;  %v453_v10 = vld [vmem:[#allocation7 + $0x20] ss:$12 sps:$4 sm:$0xff]   ;;  %v456_v11 = vld [vmem:[#allocation7 + $0x30] ss:$12 sps:$4 sm:$0xff]   ;;  %v460_v14 = vld [vmem:[#allocation7 + $0x48] ss:$12 sps:$4 sm:$0xff]   ;;  %267 = vmatprep.mubr.bf16.mxu1 %v597_v16 }
  0x3d   :  { %v458_v13 = vld [vmem:[#allocation7 + $0x4c] ss:$12 sps:$4 sm:$0xff]   ;;  %v461_v15 = vld [vmem:[#allocation7 + $0x50] ss:$12 sps:$4 sm:$0xff]   ;;  %vm231_vm2 = vcmask 523264   ;;  %v153_v26 = vshrl.u32 %v152_v25, 7 }
  0x3e   :  { %415 = vmatpush3.bf16.msra.mxu0 %v445_v2  ;;  %v386_v17 = vld [vmem:[%s712_s2] ss:$0 sm:$0xff]  ;;  %v320_v31 = vand.u32 127, %v152_v25  ;;  %s598_s2 = smov [#allocation8]  }
  0x3f   :  { %420 = vmatprep.subr.bf16.mxu0 %v595_v0  ;;  %238 = vmatpush1.bf16.msra.mxu1 %v452_v8  ;;  %v154_v27 = vsub.s32 0, %v153_v26  ;;  %v162_v28 = vsub.s32 2, %v153_v26  ;;  %v150_v29 = vld [vmem:[%s714_s4] sm:$0x7]  ;;  %v158_v30 = vsub.s32 1, %v153_v26  ;;  %s362_s4 = sshll.u32 %s598_s2, 4  ;;  %s363_s4 = int_to_ptr.vmem [resolvable:$true] %s362_s4 }
  0x40   :  { %239 = vmatprep.subr.bf16.mxu1 %v454_v9  ;;  %vm321_vm3 = vcmp.lt.s32.totalorder %v320_v31, 4  ;;  %s536_s14 = scalar_lea.vmem %s363_s4, 384  ;;  %p541_p11 = scmp.lt.s32.totalorder %s363_s4, %s363_s4 }
  0x41   :  { %417 = vmatmul.mubr.msk.bf16.vlgmr.msra.gmra.mrb[0].mxu0 %vm88_vm1, %v64_v5  ;;  %v155_v32 = vrot.slane %v150_v29, %v154_v27  ;;  %v163_v33 = vrot.slane %v150_v29, %v162_v28  ;;  %v159_v34 = vrot.slane %v150_v29, %v158_v30  ;;  %p537_p10 = scmp.ne.s32.totalorder %s363_s4, %s536_s14  ;;  %p542_p12 = scmp.lt.s32.totalorder %s536_s14, %s536_s14 }
  0x42   :  { %421 = vmatpush3.bf16.msra.mxu0 %v449_v6  ;;  %428 = vmatprep.mubr.msk.bf16.mxu0 %vm596_vm0, %v595_v0 }
  0x43   :  { %422 = vmatprep.subr.bf16.mxu0 %v595_v0  ;;  %240 = vmatpush1.bf16.msra.mxu1 %v456_v11  ;;  %p543_p13 = por %p542_p12, %p541_p11 }
  0x44   :  { %241 = vmatprep.subr.bf16.mxu1 %v458_v13 }
  0x45   :  { %p544_p0 = pnand %p543_p13, %p537_p10 }
  0x46   :  { %423 = vmatpush3.bf16.msra.mxu0 %v453_v10 }
  0x47   :  { %424 = vmatprep.subr.bf16.mxu0 %v595_v0  ;;  %242 = vmatpush1.bf16.msra.mxu1 %v460_v14 }
  0x4a   :  { %425 = vmatpush3.bf16.msra.mxu0 %v457_v12 }
  0x4b   :  { %426 = vmatprep.subr.bf16.mxu0 %v595_v0 }
  0x4e   :  { %427 = vmatpush3.bf16.msra.mxu0 %v461_v15 }
 0x114   :  { %v126_v18 = vpop.f32.mrb[0].mxu0 }
 0x115   :  { %v127_v19 = vadd.f32 %v386_v17, %v126_v18  ;;  %v418_v20 = vpop.f32.mrb[1].mxu0 }
 0x116   :  { %v129_v21 = vpop.f32.mrb[2].mxu0 }
 0x117   :  { %v132_v22 = vmax.f32 %v127_v19, 0.0  ;;  %v419_v23 = vpop.f32.mrb[3].mxu0 }
 0x119   :  { %v133_v24 = vpack.c.bf16 %v132_v22, %v132_v22 }
 0x11b   :  { %402 = vmatmul.mubr.msk.bf16.vlgmr.msra.gmra.mrb[0].mxu1 %vm231_vm2, %v133_v24  ;;  %429 = vmatmul.mubr.msk.bf16.vlgmr.msra.gmra.mrb[4].mxu0 %vm231_vm2, %v133_v24 }
 0x1ee   :  { %v269_v35 = vpop.f32.mrb[0].mxu1  ;;  %v310_v36 = vpop.f32.mrb[4].mxu0 }
 0x1ef   :  { %v679_v37 = vadd.f32 %v269_v35, %v155_v32  ;;  %v311_v38 = vadd.f32 %v310_v36, %v163_v33  ;;  %v271_v39 = vpop.f32.mrb[1].mxu1  ;;  %v430_v40 = vpop.f32.mrb[5].mxu0 }
 0x1f0   :  { %v272_v41 = vadd.f32 %v271_v39, %v159_v34  ;;  %v273_v42 = vpop.f32.mrb[2].mxu1  ;;  %v313_v43 = vpop.f32.mrb[6].mxu0 }
 0x1f1   :  { %316 = vst [vmem:[#allocation8] sm:$0xff] %v679_v37  ;;  %v338_v44 = vand.u32 2147483647, %v311_v38  ;;  %318 = vst [vmem:[#allocation8 + $0x10] sm:$0xff] %v311_v38  ;;  %v274_v45 = vpop.f32.mrb[3].mxu1  ;;  %v431_v46 = vpop.f32.mrb[7].mxu0  ;;  %vm336_vm5 = vcmp.ne.f32.partialorder %v311_v38, %v311_v38 }
 0x1f2   :  { %v322_v47 = vsel %vm321_vm3, %v679_v37, -1e+30  ;;  %317 = vst [vmem:[#allocation8 + $0x8] sm:$0xff] %v272_v41  ;;  %v335_v58 = vmax.f32 %v311_v38, 0.0 }
 0x1f3   :  { %323 = vmax.xlane.f32.xlu0 %v322_v47  ;;  %v339_v48 = vsub.f32 0.0, %v338_v44 }
 0x1f5   :  { %v340_v49 = vmul.f32 1.442695, %v339_v48 }
 0x1f7   :  { %462 = vpow2.f32 %v340_v49 }
 0x201   :  { %v463_v50 = vpop.eup %462 }
 0x202   :  { %v342_v51 = vadd.f32 1.0, %v463_v50  ;;  %v345_v52 = vmul.f32 -0.5, %v463_v50  ;;  %v348_v54 = vand.u32 2147483647, %v463_v50 }
 0x204   :  { %464 = vlog2.f32 %v342_v51  ;;  %v346_v53 = vadd.f32 1.0, %v345_v52  ;;  %vm349_vm4 = vcmp.lt.f32.partialorder %v348_v54, 0.0004427343 }
 0x206   :  { %v347_v57 = vmul.f32 %v463_v50, %v346_v53 }
 0x20e   :  { %v465_v55 = vpop.eup %464 }
 0x20f   :  { %v344_v56 = vmul.f32 0.6931472, %v465_v55 }
 0x211   :  { %v350_v59 = vsel %vm349_vm4, %v347_v57, %v344_v56 }
 0x212   :  { %v351_v60 = vadd.f32 %v350_v59, %v335_v58 }
 0x214   :  { %v352_v61 = vsel %vm336_vm5, %v311_v38, %v351_v60 }
 0x215   :  { %v353_v62 = vadd.f32 0.001, %v352_v61 }
 0x217   :  { %355 = vst [vmem:[#allocation9 + $0x8] sm:$0xff] %v353_v62 }
 0x280   :  { %v324_v63 = vpop.xlane.xlu0 %323 }
 0x281   :  { %v325_v0 = vsub.f32 %v322_v47, %v324_v63 }
 0x283   :  { %v326_v1 = vmul.f32 1.442695, %v325_v0 }
 0x285   :  { %466 = vpow2.f32 %v326_v1 }
 0x28f   :  { %v467_v2 = vpop.eup %466 }
 0x290   :  { %v328_v3 = vsel %vm321_vm3, %v467_v2, 0.0 }
 0x291   :  { %329 = vadd.xlane.f32.xlu0 %v328_v3 }
 0x292   :  { %547 = shalt.err (!%p544_p0)
}
 0x293   :  { %s548_s17 = scalar_lea.hbm %s715_s5, 384 }
 0x294   :  { %p549_p1 = scmp.ne.s32.totalorder %s715_s5, %s548_s17  ;;  %p552_p2 = scmp.lt.u32.totalorder %s548_s17, %s715_s5 }
 0x296   :  { %p554_p3 = pnand %p552_p2, %p549_p1 }
 0x298   :  { %557 = shalt.err (!%p554_p3)
}
 0x299   :  { %365 = dma.vmem_to_hbm [thread:$0]  %s363_s4, 384, %s715_s5, [#allocation4]  }
 0x29a   :  { %s599_s23 = smov [#allocation9]  }
 0x29b   :  { %s372_s24 = sshll.u32 %s599_s23, 4  ;;  %s373_s24 = int_to_ptr.vmem [resolvable:$true] %s372_s24 }
 0x29c   :  { %s558_s25 = scalar_lea.vmem %s373_s24, 256  ;;  %p563_p5 = scmp.lt.s32.totalorder %s373_s24, %s373_s24 }
 0x29d   :  { %p559_p4 = scmp.ne.s32.totalorder %s373_s24, %s558_s25  ;;  %p564_p6 = scmp.lt.s32.totalorder %s558_s25, %s558_s25 }
 0x29f   :  { %p565_p7 = por %p564_p6, %p563_p5 }
 0x2a1   :  { %p566_p8 = pnand %p565_p7, %p559_p4 }
 0x31e   :  { %v330_v4 = vpop.xlane.xlu0 %329 }
 0x31f   :  { %468 = vlog2.f32 %v330_v4 }
 0x329   :  { %v469_v5 = vpop.eup %468 }
 0x32a   :  { %v332_v6 = vmul.f32 0.6931472, %v469_v5 }
 0x32c   :  { %v333_v7 = vadd.f32 %v332_v6, %v324_v63 }
 0x32e   :  { %v334_v8 = vsub.f32 %v679_v37, %v333_v7 }
 0x330   :  { %354 = vst [vmem:[#allocation9] sm:$0xff] %v334_v8 }
 0x331   :  { %569 = shalt.err (!%p566_p8)
}
 0x332   :  { %s570_s27 = scalar_lea.hbm %s716_s6, 256 }
 0x333   :  { %p571_p9 = scmp.ne.s32.totalorder %s716_s6, %s570_s27  ;;  %p574_p10 = scmp.lt.u32.totalorder %s570_s27, %s716_s6 }
 0x335   :  { %p576_p11 = pnand %p574_p10, %p571_p9 }
 0x337   :  { %579 = shalt.err (!%p576_p11)
}
 0x338   :  { %375 = dma.vmem_to_hbm [thread:$0]  %s373_s24, 256, %s716_s6, [#allocation10]  }
 0x339   :  { %584 = dma.done.wait [#allocation4], 384  }
 0x33a   :  { %585 = vsyncadd [#allocation4], 4294966912 }
 0x33b   :  { %586 = dma.done.wait [#allocation10], 256  }
 0x33c   :  { %587 = vsyncadd [#allocation10], 4294967040 }
 0x33d   :  { %382 = vsyncpa [#allocation3], 1 }
 0x33e   :  { %383 = vsyncpa [#allocation6], 1 }
 0x33f   :  { %384 = vsyncpa [#allocation4], 1 }
 0x340   :  { %385 = vsyncpa [#allocation10], 1 }

</bundles_post_ra>
